<compile_context>
chip_gen: v5e
topology: v5e:2x2
jax: 0.10.0
libtpu: 0.0.40
codegen_flags: <defaults>
</compile_context>

<pallas_src>
from functools import partial

import jax
import jax.numpy as jnp
from jax.experimental import pallas as pl
from jax.experimental.pallas import tpu as pltpu

EPS = 1e-5


def _stats_kernel(x_ref, xsum_ref, gram_ref, *, tile_l, valid_l, needs_mask):
    """Pass 1: per-batch-element input statistics.

    x_ref:    (Ck, TILE_L) channels-first input tile (T*V on the lane axis, native dtype)
    xsum_ref: (Ck, 1)      running per-channel sum      (resident per-n accumulator)
    gram_ref: (Ck, Ck)     running Gram matrix x @ x^T  (resident per-n accumulator)
    """
    l = pl.program_id(1)

    @pl.when(l == 0)
    def _():
        xsum_ref[...] = jnp.zeros_like(xsum_ref)
        gram_ref[...] = jnp.zeros_like(gram_ref)

    xv = x_ref[...]
    if needs_mask:  # trace-time flag: only the last (partial) L tile needs masking
        col = jax.lax.broadcasted_iota(jnp.int32, xv.shape, 1) + l * tile_l
        xv = jnp.where(col < valid_l, xv, jnp.zeros_like(xv))

    xsum_ref[...] += jnp.sum(xv.astype(jnp.float32), axis=1, keepdims=True)
    gram_ref[...] += jax.lax.dot_general(  # x @ x^T, contraction over the lane axis (MXU)
        xv, xv, (((1,), (1,)), ((), ())), preferred_element_type=jnp.float32)


def _apply_kernel(x_ref, w_ref, xsum_ref, gram_ref, gb_ref, o_ref, *, inv_count):
    """Pass 2: o = BN(conv(x)) with the BN finalize fused in-kernel.

    The finalize math is O(Cout*Ck^2) per tile -- negligible next to the tile matmul --
    which keeps it scratch-free and megacore-safe (no cross-step init ordering needed).
    """
    w = w_ref[...]                                                   # (Cout, Ck) f32
    mean_x = xsum_ref[...] * inv_count                               # (Ck, 1)
    mean_u = jnp.dot(w, mean_x, preferred_element_type=jnp.float32)  # E[W x]      (Cout,1)
    wg = jnp.dot(w, gram_ref[...], preferred_element_type=jnp.float32)   # W @ G   (Cout,Ck)
    ex2 = jnp.sum(wg * w, axis=1, keepdims=True) * inv_count         # E[(W x)^2]  (Cout,1)
    var = ex2 - mean_u * mean_u
    scale = gb_ref[:, 0:1] * jax.lax.rsqrt(var + EPS)                # gamma * inv_std
    shift = gb_ref[:, 1:2] - scale * mean_u                          # beta - scale*mean
    u = jnp.dot(w, x_ref[...], preferred_element_type=jnp.float32)   # (Cout, TILE_L)
    o_ref[...] = (u * scale + shift).astype(o_ref.dtype)


def _tile_and_budget(L, ck, cout, in_bytes):
    """Lane-dense tile over the flattened T*V axis + explicit scoped-VMEM limit.

    Generation-aware budget via get_tpu_info (v5e/v6e: 128 MiB, v7x: 64 MiB physical);
    the per-column estimate includes the double-buffered x and out tiles plus the f32
    matmul intermediate of the apply pass.
    """
    try:
        vmem_cap = int(getattr(pltpu.get_tpu_info(), "vmem_capacity_bytes", 128 << 20))
    except Exception:  # interpret mode / older runtimes
        vmem_cap = 64 << 20
    vmem_limit = int(min(32 << 20, vmem_cap // 2))
    budget = min(16 << 20, vmem_cap // 4)
    per_col = 2 * ck * in_bytes + 2 * cout * in_bytes + cout * 4
    cols = (budget // per_col) // 128 * 128
    cols = max(cols, 64 * 128)               # >=8K lane cols/step amortizes ~0.35us/step
    if cols >= L:
        return int(L), vmem_limit            # single full-extent block (always legal)
    return int(cols), vmem_limit             # multiple-of-128 tile; edge block is masked


def init_params(key, in_channels, out_channels, kernel_size=1):
    """Deterministic synthetic parameters matching PyTorch's default conv init shapes."""
    k1, k2, k3, k4 = jax.random.split(key, 4)
    # depthwise conv: torch weight (Cin, 1, k, 1), bias (Cin,); fan_in = 1*k*1
    bd = 1.0 / (kernel_size ** 0.5)
    dw = jax.random.uniform(k1, (kernel_size, in_channels), jnp.float32, -bd, bd)
    db = jax.random.uniform(k2, (in_channels,), jnp.float32, -bd, bd)
    # pointwise conv: torch weight (Cout, Cin, 1, 1), bias (Cout,); fan_in = Cin
    bp = 1.0 / (in_channels ** 0.5)
    pw = jax.random.uniform(k3, (out_channels, in_channels), jnp.float32, -bp, bp)
    pb = jax.random.uniform(k4, (out_channels,), jnp.float32, -bp, bp)
    # bn_init(bn, 1): gamma = 1, beta = 0
    gamma = jnp.ones((out_channels,), jnp.float32)
    beta = jnp.zeros((out_channels,), jnp.float32)
    return dict(dw=dw, db=db, pw=pw, pb=pb, gamma=gamma, beta=beta)


def unit_tcn_skip_forward(x, params, kernel_size=1, stride=1):
    """x: NCHW (N, Cin, T, V) -> NCHW (N, Cout, Tout, V), dtype preserved."""
    N, Cin, T, V = x.shape
    k, s = kernel_size, stride
    dw, pw = params["dw"], params["pw"]            # (k, Cin), (Cout, Cin)
    gamma, beta = params["gamma"], params["beta"]  # (Cout,), (Cout,)
    Cout = pw.shape[0]
    Tout = (T - k) // s + 1
    L = Tout * V
    Ck = k * Cin

    # ---- layout glue (input dtype preserved; no eager f32 upcast).
    if k == 1:
        xs = x if s == 1 else x[:, :, : s * (Tout - 1) + 1 : s, :]
        x_eff = xs.reshape(N, Cin, L)              # pure view for s == 1
    else:
        # TODO(synk): gather the k temporal taps in-kernel (halo T-blocks + strided
        # pl.ds reads) to avoid this k-fold im2col duplication of HBM traffic for k > 1.
        taps = [x[:, :, j : j + s * (Tout - 1) + 1 : s, :] for j in range(k)]
        x_eff = jnp.concatenate(taps, axis=1).reshape(N, Ck, L)

    # ---- fold depthwise + pointwise conv into one (Cout, k*Cin) weight.  The conv
    # biases are per-channel constants and cancel exactly under train-mode BatchNorm.
    Wc = (pw[:, None, :] * dw[None, :, :]).reshape(Cout, Ck).astype(jnp.float32)
    gb = jnp.stack([gamma, beta], axis=1).astype(jnp.float32)          # (Cout, 2)

    in_bytes = jnp.dtype(x.dtype).itemsize
    TILE_L, vmem_limit = _tile_and_budget(L, Ck, Cout, in_bytes)
    grid = (N, pl.cdiv(L, TILE_L))

    x_spec = pl.BlockSpec((None, Ck, TILE_L), lambda n, l: (n, 0, l))

    # ---- pass 1: per-n input statistics (sum + Gram), N axis parallel (v7x megacore).
    xsum_n, gram_n = pl.pallas_call(
        partial(_stats_kernel, tile_l=TILE_L, valid_l=L, needs_mask=(L % TILE_L != 0)),
        grid=grid,
        in_specs=[x_spec],
        out_specs=[pl.BlockSpec((None, Ck, 1), lambda n, l: (n, 0, 0)),
                   pl.BlockSpec((None, Ck, Ck), lambda n, l: (n, 0, 0))],
        out_shape=[jax.ShapeDtypeStruct((N, Ck, 1), jnp.float32),
                   jax.ShapeDtypeStruct((N, Ck, Ck), jnp.float32)],
        compiler_params=pltpu.CompilerParams(
            dimension_semantics=("parallel", "arbitrary"),
            vmem_limit_bytes=vmem_limit),
    )(x_eff)

    # ---- tiny cross-N combine of the partial stats (only XLA ops between the passes).
    xsum = jnp.sum(xsum_n, axis=0)     # (Ck, 1)
    gram = jnp.sum(gram_n, axis=0)     # (Ck, Ck)

    # ---- pass 2: conv + fused BN finalize, fully parallel tiles (megacore on v7x).
    out_flat = pl.pallas_call(
        partial(_apply_kernel, inv_count=1.0 / float(N * L)),
        grid=grid,
        in_specs=[x_spec,
                  pl.BlockSpec((Cout, Ck), lambda n, l: (0, 0)),
                  pl.BlockSpec((Ck, 1), lambda n, l: (0, 0)),
                  pl.BlockSpec((Ck, Ck), lambda n, l: (0, 0)),
                  pl.BlockSpec((Cout, 2), lambda n, l: (0, 0))],
        out_specs=pl.BlockSpec((None, Cout, TILE_L), lambda n, l: (n, 0, l)),
        out_shape=jax.ShapeDtypeStruct((N, Cout, L), x.dtype),
        compiler_params=pltpu.CompilerParams(
            dimension_semantics=("parallel", "parallel"),
            vmem_limit_bytes=vmem_limit),
    )(x_eff, Wc, xsum, gram, gb)

    return out_flat.reshape(N, Cout, Tout, V)


def _reference(x, params, kernel_size=1, stride=1):
    """Pure-JAX reference of the same forward pass (unfused) for validation."""
    x = x.astype(jnp.float32)
    N, Cin, T, V = x.shape
    Tout = (T - kernel_size) // stride + 1
    acc = jnp.zeros((N, Cin, Tout, V), jnp.float32)
    for j in range(kernel_size):
        sl = x[:, :, j: j + stride * (Tout - 1) + 1: stride, :]
        acc = acc + sl * params["dw"][j][None, :, None, None]
    y = acc + params["db"][None, :, None, None]
    z = jnp.einsum("nctv,oc->notv", y, params["pw"]) + params["pb"][None, :, None, None]
    mean = jnp.mean(z, axis=(0, 2, 3), keepdims=True)
    var = jnp.mean(jnp.square(z - mean), axis=(0, 2, 3), keepdims=True)
    zn = (z - mean) * jax.lax.rsqrt(var + EPS)
    return zn * params["gamma"][None, :, None, None] + params["beta"][None, :, None, None]


if __name__ == "__main__":
    key = jax.random.PRNGKey(0)
    kx, kp, kx2, kp2 = jax.random.split(key, 4)

    N, Cin, Cout, T, V = 2, 4, 8, 16, 16

    # Module defaults: kernel_size=1, stride=1.
    x = jax.random.normal(kx, (N, Cin, T, V), jnp.float32)
    params = init_params(kp, Cin, Cout, kernel_size=1)
    out = jax.block_until_ready(unit_tcn_skip_forward(x, params, 1, 1))
    ref = _reference(x, params, 1, 1)
    assert out.shape == (N, Cout, T, V), out.shape
    assert jnp.allclose(out, ref, atol=1e-4, rtol=1e-4), float(jnp.max(jnp.abs(out - ref)))

    # Strided temporal window (exercises the general k/stride path).
    k2, s2 = 3, 2
    x2 = jax.random.normal(kx2, (N, Cin, T, V), jnp.float32)
    params2 = init_params(kp2, Cin, Cout, kernel_size=k2)
    out2 = jax.block_until_ready(unit_tcn_skip_forward(x2, params2, k2, s2))
    ref2 = _reference(x2, params2, k2, s2)
    Tout2 = (T - k2) // s2 + 1
    assert out2.shape == (N, Cout, Tout2, V), out2.shape
    assert jnp.allclose(out2, ref2, atol=1e-4, rtol=1e-4), float(jnp.max(jnp.abs(out2 - ref2)))

    print("KERNEL_OK")
</pallas_src>

<mosaic_0001>
module attributes {stable_mosaic.version = 11 : i64} {
  func.func @_stats_kernel(%arg0: i32, %arg1: i32, %arg2: memref<1x4x256xf32, #tpu.memory_space<vmem>>, %arg3: memref<1x4x1xf32, #tpu.memory_space<vmem>>, %arg4: memref<1x4x4xf32, #tpu.memory_space<vmem>>) attributes {dimension_semantics = [#tpu.dimension_semantics<parallel>, #tpu.dimension_semantics<arbitrary>], iteration_bounds = array<i64: 2, 1>, scalar_prefetch = 0 : i64, scratch_operands = 0 : i64, tpu.core_type = #tpu.core_type<tc>, window_params = [{transform_indices = @transform_0, window_bounds = array<i64: 1, 4, 256>}, {transform_indices = @transform_1, window_bounds = array<i64: 1, 4, 1>}, {transform_indices = @transform_2, window_bounds = array<i64: 1, 4, 4>}]} {
    %c0_i32 = arith.constant 0 : i32
    %0 = arith.cmpi eq, %arg1, %c0_i32 : i32
    %1 = arith.extui %0 : i1 to i32
    %c0_i32_0 = arith.constant 0 : i32
    %2 = arith.cmpi ne, %1, %c0_i32_0 : i32
    scf.if %2 {
      %cst_16 = arith.constant 0.000000e+00 : f32
      %20 = vector.broadcast %cst_16 : f32 to vector<4x1xf32>
      %c0_17 = arith.constant 0 : index
      %c0_18 = arith.constant 0 : index
      %c0_19 = arith.constant 0 : index
      %21 = vector.load %arg3[%c0_17, %c0_18, %c0_19] : memref<1x4x1xf32, #tpu.memory_space<vmem>>, vector<1x4x1xf32>
      %22 = vector.shape_cast %21 : vector<1x4x1xf32> to vector<4x1xf32>
      %23 = vector.shape_cast %20 : vector<4x1xf32> to vector<1x4x1xf32>
      tpu.vector_store %arg3[%c0_17, %c0_18, %c0_19], %23 {strides = array<i32>} : memref<1x4x1xf32, #tpu.memory_space<vmem>>, vector<1x4x1xf32>,
      %cst_20 = arith.constant 0.000000e+00 : f32
      %24 = vector.broadcast %cst_20 : f32 to vector<4x4xf32>
      %c0_21 = arith.constant 0 : index
      %c0_22 = arith.constant 0 : index
      %c0_23 = arith.constant 0 : index
      %25 = vector.load %arg4[%c0_21, %c0_22, %c0_23] : memref<1x4x4xf32, #tpu.memory_space<vmem>>, vector<1x4x4xf32>
      %26 = vector.shape_cast %25 : vector<1x4x4xf32> to vector<4x4xf32>
      %27 = vector.shape_cast %24 : vector<4x4xf32> to vector<1x4x4xf32>
      tpu.vector_store %arg4[%c0_21, %c0_22, %c0_23], %27 {strides = array<i32>} : memref<1x4x4xf32, #tpu.memory_space<vmem>>, vector<1x4x4xf32>,
    } else {
    }
    %c0 = arith.constant 0 : index
    %c0_1 = arith.constant 0 : index
    %c0_2 = arith.constant 0 : index
    %3 = vector.load %arg2[%c0, %c0_1, %c0_2] : memref<1x4x256xf32, #tpu.memory_space<vmem>>, vector<1x4x256xf32>
    %4 = vector.shape_cast %3 : vector<1x4x256xf32> to vector<4x256xf32>
    %c0_3 = arith.constant 0 : index
    %c0_4 = arith.constant 0 : index
    %c0_5 = arith.constant 0 : index
    %5 = vector.load %arg3[%c0_3, %c0_4, %c0_5] : memref<1x4x1xf32, #tpu.memory_space<vmem>>, vector<1x4x1xf32>
    %6 = vector.shape_cast %5 : vector<1x4x1xf32> to vector<4x1xf32>
    %cst = arith.constant dense<0.000000e+00> : vector<4xf32>
    %7 = vector.multi_reduction <add>, %4, %cst [1] : vector<4x256xf32> to vector<4xf32>
    %8 = vector.shape_cast %7 : vector<4xf32> to vector<4x1xf32>
    %9 = arith.addf %6, %8 : vector<4x1xf32>
    %c0_6 = arith.constant 0 : index
    %c0_7 = arith.constant 0 : index
    %c0_8 = arith.constant 0 : index
    %10 = vector.load %arg3[%c0_6, %c0_7, %c0_8] : memref<1x4x1xf32, #tpu.memory_space<vmem>>, vector<1x4x1xf32>
    %11 = vector.shape_cast %10 : vector<1x4x1xf32> to vector<4x1xf32>
    %12 = vector.shape_cast %9 : vector<4x1xf32> to vector<1x4x1xf32>
    tpu.vector_store %arg3[%c0_6, %c0_7, %c0_8], %12 {strides = array<i32>} : memref<1x4x1xf32, #tpu.memory_space<vmem>>, vector<1x4x1xf32>,
    %c0_9 = arith.constant 0 : index
    %c0_10 = arith.constant 0 : index
    %c0_11 = arith.constant 0 : index
    %13 = vector.load %arg4[%c0_9, %c0_10, %c0_11] : memref<1x4x4xf32, #tpu.memory_space<vmem>>, vector<1x4x4xf32>
    %14 = vector.shape_cast %13 : vector<1x4x4xf32> to vector<4x4xf32>
    %cst_12 = arith.constant dense<0.000000e+00> : vector<4x4xf32>
    %15 = tpu.matmul %4, %4, %cst_12 {dimension_numbers = #tpu.dot_dimension_numbers<[1], [1], [0], [0], [0, 0, 1, 0], [], []>} : vector<4x256xf32>, vector<4x256xf32>, vector<4x4xf32> -> vector<4x4xf32>
    %16 = arith.addf %14, %15 : vector<4x4xf32>
    %c0_13 = arith.constant 0 : index
    %c0_14 = arith.constant 0 : index
    %c0_15 = arith.constant 0 : index
    %17 = vector.load %arg4[%c0_13, %c0_14, %c0_15] : memref<1x4x4xf32, #tpu.memory_space<vmem>>, vector<1x4x4xf32>
    %18 = vector.shape_cast %17 : vector<1x4x4xf32> to vector<4x4xf32>
    %19 = vector.shape_cast %16 : vector<4x4xf32> to vector<1x4x4xf32>
    tpu.vector_store %arg4[%c0_13, %c0_14, %c0_15], %19 {strides = array<i32>} : memref<1x4x4xf32, #tpu.memory_space<vmem>>, vector<1x4x4xf32>,
    return
  }
  func.func @transform_0(%arg0: i32, %arg1: i32) -> (i32, i32, i32) {
    %c0_i32 = arith.constant 0 : i32
    %c0_i32_0 = arith.constant 0 : i32
    return %arg0, %c0_i32, %arg1 : i32, i32, i32
  }
  func.func @transform_1(%arg0: i32, %arg1: i32) -> (i32, i32, i32) {
    %c0_i32 = arith.constant 0 : i32
    %c0_i32_0 = arith.constant 0 : i32
    %c0_i32_1 = arith.constant 0 : i32
    return %arg0, %c0_i32, %c0_i32_0 : i32, i32, i32
  }
  func.func @transform_2(%arg0: i32, %arg1: i32) -> (i32, i32, i32) {
    %c0_i32 = arith.constant 0 : i32
    %c0_i32_0 = arith.constant 0 : i32
    %c0_i32_1 = arith.constant 0 : i32
    return %arg0, %c0_i32, %c0_i32_0 : i32, i32, i32
  }
}

</mosaic_0001>

<bundles_post_ra>
// kernel: tpu_custom_call.1
= control target key start
LH: loop header
LB: loop body
LE: loop exit
PB: predicated region body
PF: predicated region fallthrough
CT: control target
= control target key end

     0   :  { %8 = vsyncpa [#allocation3], 0  ;;  %s734_s0 = inlined_call_operand.hbm [shape: f32[2,4,256], index: 0, kind: input, shape index: {}]   ;;  %s735_s1 = inlined_call_operand.vmem [shape: f32[2,4,1], index: 1, kind: output, shape index: {0}]   ;;  %s736_s2 = inlined_call_operand.hbm [shape: f32[2,4,4], index: 2, kind: output, shape index: {1}]  }
   0x1   :  { %10 = vsyncpa [#allocation3 + $0x1], 0 }
   0x2   :  { %11 = vsyncpa [#allocation4], 0 }
   0x3   :  { %13 = vsyncpa [#allocation4 + $0x1], 0  ;;  %s606_s9 = smov 0   ;;  %s608_s10 = smov 0  }
   0x4   :  { %s610_s11 = smov 0   ;;  %s612_s12 = smov 0  }
   0x5   :  { %s614_s13 = smov 0   ;;  %s616_s14 = smov 0  }
   0x6 LB: > { %s397_s15 = sadd.s32 4294967295, %s588_s14   ;;  %s398_s16 = sadd.s32 4294967294, %s588_s14   ;;  %s588_s14 = sphi %s616_s14, %s19_s14   ;;  %s584_s13 = sphi %s614_s13, %s745_s13   ;;  %s580_s12 = sphi %s612_s12, %s744_s12   ;;  %s576_s11 = sphi %s610_s11, %s743_s11   ;;  %s572_s10 = sphi %s608_s10, %s742_s10   ;;  %s568_s9 = sphi %s606_s9, %s741_s9  }
   0x7   : > { %s31_s17 = sadd.s32 1, %s584_s13  ;;  %s40_s18 = sadd.s32 1, %s576_s11 }
   0x8   : > { %p33_p0 = scmp.ge.s32.totalorder %s31_s17, 2  ;;  %p47_p1 = scmp.ne.s32.totalorder %s576_s11, %s572_s10 }
   0x9   : > { %p48_p2 = scmp.eq.s32.totalorder %s588_s14, 0  ;;  %p53_p3 = scmp.ne.s32.totalorder %s572_s10, %s568_s9 }
   0xa   : > { %s747_s17 = smov (%p33_p0, %s31_s17), 0  ;;  %p54_p5 = scmp.eq.s32.totalorder %s397_s15, 0 }
   0xb   : > { %p647_p4 = por %p48_p2, %p47_p1  ;;  %s35_s20 = ssub.s32 %s584_s13, %s747_s17 }
   0xc   : > { %p103_p6 = scmp.eq.s32.totalorder %s397_s15, 1  ;;  %p38_p7 = scmp.eq.s32.totalorder %s35_s20, 0 }
   0xd   : > { %p653_p8 = por %p54_p5, %p53_p3  ;;  %p109_p10 = scmp.eq.s32.totalorder %s398_s16, 1 }
   0xe   : > { %p657_p9 = por %p103_p6, %p47_p1  ;;  %p400_p12 = scmp.ge.s32.totalorder %s588_s14, 2 }
   0xf   : > { %s662_s23 = scalar_select %p38_p7, %s576_s11, %s40_s18  }
  0x10   : > { %p664_p11 = por %p109_p10, %p53_p3  ;;  %p425_p13 = scmp.lt.s32.totalorder %s588_s14, 2 }
  0x11   : > { %s129_s25 = sand.u32 1, %s576_s11   ;;  %s412_s27 = sshll.u32 %s584_s13, 3 }
  0x12   : > { %s401_s26 = sshll.u32 %s129_s25, 3  ;;  %s140_s30 = scalar_lea.hbm %s734_s0, %s412_s27 }
  0x13   : > { %s133_s3 = scalar_lea.vmem [#allocation2], %s401_s26  ;;  %s142_s5 = sshll.u32 %s140_s30, 4  ;;  %s143_s5 = int_to_ptr.hbm [resolvable:$true] %s142_s5 }
  0x14   : > { %s144_s4 = sshll.u32 %s133_s3, 4  ;;  %p418_p0 = pnand %p425_p13, %p647_p4  ;;  %s145_s4 = int_to_ptr.vmem [resolvable:$true] %s144_s4 }
  0x15   : > { %p404_p1 = scmp.ge.s32.totalorder %s588_s14, 1  ;;  %p149_p2 = scmp.lt.s32.totalorder %s588_s14, 3 }
  0x16   : > { %s130_s6 = scalar_lea.sflag [#allocation3], %s129_s25 }
  0x17   : > { %420 = dma.hbm_to_vmem [thread:$0]  (!%p418_p0), %s143_s5, 128, %s145_s4, %s130_s6  }
  0x18   : > { %p150_p3 = pnand %p404_p1, %p149_p2 }
  0x19   : > { %s680_s7 = sand.u32 (!%p150_p3), 1, %s572_s10  }
  0x1a   : > { %153 = sbr.rel (%p150_p3) target bundleno = 193 (0xc1), region = 24  ;;  %s405_s8 = sshll.u32 (!%p150_p3), %s680_s7, 3 }
  0x1b   : > { %s156_s15 = scalar_lea.sflag (!%p150_p3), [#allocation3], %s680_s7  ;;  %s159_s16 = scalar_lea.vmem (!%p150_p3), [#allocation2], %s405_s8 }
  0x1f   : > { %559 = dma.done.wait (%p653_p8), %s156_s15, 128  }
  0x20   : > { %561 = vsyncadd (%p653_p8), %s156_s15, 4294967168  ;;  %v198_v0 = vld [vmem:[%s159_s16] sm:$0xff]  ;;  %vm206_vm0 = vcmask 1043456   ;;  %p186_p4 = scmp.lt.s32.totalorder %s580_s12, 1  ;;  %s406_s19 = sshll.u32 %s680_s7, 2  ;;  %vm196_vm1 = vcmask 27648  }
  0x21   : > { %201 = vst [vmem:[#allocation1] ss:$2 sm:$0xff] %v198_v0  ;;  %s184_s27 = scalar_lea.vmem [#allocation5], %s406_s19  ;;  %v590_v10 = vmov 0.0   ;;  %vm194_vm2 = vcmask 3072   ;;  %s409_s28 = sshll.u32 %s580_s12, 2 }
  0x22   : > { %s187_s18 = scalar_select %p186_p4, %s580_s12, 1  ;;  %197 = vst.msk [vmem:[%s184_s27] sm:$0xf] %vm196_vm1, %v590_v10 }
  0x23   : > { %s287_s3 = scalar_lea.hbm %s736_s2, %s409_s28  ;;  %s289_s4 = sshll.u32 %s184_s27, 4  ;;  %s290_s4 = int_to_ptr.vmem [resolvable:$true] %s289_s4 }
  0x24   : > { %s407_s20 = sshll.u32 %s187_s18, 2  ;;  %s291_s5 = sshll.u32 %s287_s3, 4  ;;  %s292_s5 = int_to_ptr.hbm [resolvable:$true] %s291_s5 }
  0x25   : > { %s189_s26 = scalar_lea.vmem %s735_s1, %s407_s20  ;;  %s274_s6 = scalar_lea.sflag [#allocation4], %s680_s7 }
  0x26   : > { %195 = vst.msk [vmem:[%s189_s26] sm:$0xf] %vm194_vm2, %v590_v10  ;;  %s520_s8 = sshra.s32 %s292_s5, 4  ;;  %s526_s18 = scalar_lea.hbm %s736_s2, 8  ;;  %s521_s8 = int_to_ptr.hbm [resolvable:$true] %s520_s8 }
  0x27   : > { %s522_s12 = scalar_lea.hbm %s521_s8, 4  ;;  %p527_p8 = scmp.lt.s32.totalorder %s521_s8, %s736_s2 }
  0x28   : > { %v202_v1 = vld.sshfl [vmem:[#allocation1] sm:$0xff pattern:$0x75316420]  ;;  %v203_v2 = vld.sshfl [vmem:[#allocation1 + $0x8] sm:$0xff pattern:$0x75316420]  ;;  %p523_p5 = scmp.ne.s32.totalorder %s521_s8, %s522_s12  ;;  %p528_p10 = scmp.lt.s32.totalorder %s526_s18, %s522_s12 }
  0x29   : > { %216 = vst [vmem:[#allocation1] ss:$2 sm:$0xff] %v198_v0  ;;  %v207_v3 = vsel %vm206_vm0, %v202_v1, 0.0  ;;  %v208_v4 = vsel %vm206_vm0, %v203_v2, 0.0  ;;  %v215_v15 = vld [vmem:[%s184_s27] sm:$0xf] }
  0x2a   : > { %v209_v5 = vadd.f32 %v208_v4, %v207_v3  ;;  %p524_p6 = pnand %p523_p5, %p657_p9  ;;  %p529_p13 = por %p528_p10, %p527_p8 }
  0x2c   : > { %210 = vadd.xlane.f32.xlu0 %v209_v5  ;;  %p525_p7 = pneg %p524_p6 }
  0x2d   : > { %v199_v11 = vld [vmem:[%s189_s26] sm:$0xf] }
  0x2e   : > { %p530_p0 = pnand %p529_p13, %p525_p7 }
  0x30   : > { %v217_v6 = vld.sshfl [vmem:[#allocation1] sm:$0xff pattern:$0x75316420]  ;;  %v218_v7 = vld.sshfl [vmem:[#allocation1 + $0x8] sm:$0xff pattern:$0x75316420] }
  0x31   : > { %221 = vst [vmem:[#allocation1] ss:$2 sm:$0xff] %v198_v0 }
  0x38   : > { %v222_v8 = vld.sshfl [vmem:[#allocation1] sm:$0xff pattern:$0x75316420]  ;;  %v223_v9 = vld.sshfl [vmem:[#allocation1 + $0x8] sm:$0xff pattern:$0x75316420] }
  0x39   : > { %241 = vmatpush.xpose.msra.mxu0 %v222_v8  ;;  %261 = vmatpush.xpose.msra.mxu1 %v223_v9 }
  0x3c   : > { %242 = vmatmul.f32.vlgmr.msra.gmra.mxu0 %v217_v6  ;;  %262 = vmatmul.f32.vlgmr.msra.gmra.mxu1 %v218_v7 }
  0x9f   : > { %v211_v12 = vpop.xlane.xlu0 %210 }
  0xa0   : > { %v212_v13 = vadd.f32 %v211_v12, %v199_v11 }
  0xa2   : > { %214 = vst.msk [vmem:[%s189_s26] sm:$0xf] %vm194_vm2, %v212_v13 }
  0xb9   : > { %v243_v14 = vpop.f32.mrf.mxu0  ;;  %v263_v16 = vpop.f32.mrf.mxu1 }
  0xba   : > { %v264_v17 = vadd.f32 %v263_v16, %v243_v14 }
  0xbc   : > { %v266_v18 = vadd.f32 %v264_v17, %v215_v15 }
  0xbe   : > { %268 = vst.msk [vmem:[%s184_s27] sm:$0xf] %vm196_vm1, %v266_v18 }
  0xbf   : > { %533 = shalt.err (!%p530_p0)
}
  0xc0   : > { %415 = dma.vmem_to_hbm [thread:$0]  (%p657_p9), %s290_s4, 64, %s292_s5, %s274_s6  }
  0xc1 PF: > { %s310_s7 = sand.u32 1, %s568_s9   ;;  %p422_p1 = pnand %p400_p12, %p664_p11 }
  0xc2   : > { %s311_s21 = scalar_lea.sflag [#allocation4], %s310_s7 }
  0xc3   : > { %p423_p2 = pneg %p422_p1 }
  0xc5   : > { %563 = dma.done.wait (%p423_p2), %s311_s21, 64  }
  0xc6   : > { %565 = vsyncadd (%p423_p2), %s311_s21, 4294967232  ;;  %s19_s14 = sadd.s32 1, %s588_s14   ;;  %s741_s9 = smov %s572_s10 }
  0xc7   : > { %p16_p3 = scmp.ge.s32.totalorder %s19_s14, 4   ;;  %s742_s10 = smov %s576_s11 }
  0xc8   : > { %s743_s11 = smov %s662_s23  ;;  %s744_s12 = smov %s584_s13 }
  0xc9   : > { %s745_s13 = smov %s747_s17  ;;  %18 = sbr.rel (!%p16_p3) target bundleno = 6 (0x6), region = 85 }
  0xce   :  { %317 = vsyncpa [#allocation3], 1 }
  0xcf   :  { %319 = vsyncpa [#allocation3 + $0x1], 1 }
  0xd0   :  { %320 = vsyncpa [#allocation4], 1 }
  0xd1   :  { %322 = vsyncpa [#allocation4 + $0x1], 1 }

</bundles_post_ra>
